<compile_context>
chip_gen: v5e
topology: v5e:2x2
jax: 0.10.0
libtpu: 0.0.40
codegen_flags: <defaults>
</compile_context>

<pallas_src>
import functools

import jax
import jax.numpy as jnp
from jax.experimental import pallas as pl
from jax.experimental.pallas import tpu as pltpu


def _round_up(x: int, m: int) -> int:
    return (x + m - 1) // m * m


def _vmem_budget_bytes() -> int:
    """Generation-aware VMEM budget (~75% of per-core capacity, capped)."""
    try:
        cap = int(pltpu.get_tpu_info().vmem_capacity_bytes)
    except Exception:
        cap = 64 << 20  # conservative: v7x has 64 MiB per TensorCore
    return min(cap * 3 // 4, 96 << 20)


def _resident_head_kernel(temp_ref, x_ref, w_ref, b_ref, o_ref):
    # temp_ref: SMEM (1,)       f32  -- temperature parameter
    # x_ref:    VMEM (tm, D)         -- flattened input tile (bf16/f32)
    # w_ref:    VMEM (D,  Np)        -- full classifier weight, VMEM-resident
    # b_ref:    VMEM (1,  Np)   f32  -- classifier bias (padded)
    # o_ref:    VMEM (tm, Np)   f32  -- temperature-scaled logits tile
    inv_t = 1.0 / temp_ref[0]
    acc = jnp.dot(x_ref[...], w_ref[...], preferred_element_type=jnp.float32)
    o_ref[...] = ((acc + b_ref[...]) * inv_t).astype(o_ref.dtype)


def _ktiled_head_kernel(temp_ref, x_ref, w_ref, b_ref, o_ref, acc_ref):
    # Fallback for D too large to hold the whole weight slab in VMEM.
    k = pl.program_id(1)

    @pl.when(k == 0)
    def _init():
        acc_ref[...] = jnp.zeros_like(acc_ref)

    acc_ref[...] += jnp.dot(
        x_ref[...], w_ref[...], preferred_element_type=jnp.float32
    )

    # Bias + temperature scaling only on the final K step (never scale partial
    # sums).
    @pl.when(k == pl.num_programs(1) - 1)
    def _finalize():
        inv_t = 1.0 / temp_ref[0]
        o_ref[...] = ((acc_ref[...] + b_ref[...]) * inv_t).astype(o_ref.dtype)


@functools.partial(jax.jit, static_argnames=("tk", "use_bf16_inputs"))
def model_with_temperature_forward(
    x_nchw, weight, bias, temperature, *, tk=2048, use_bf16_inputs=True
):
    """Forward pass of ModelWithTemperature with a linear classifier inside.

    x_nchw:      [B, C, H, W] float32
    weight:      [D, NUM_CLASSES] float32, D = C*H*W
    bias:        [NUM_CLASSES] float32
    temperature: [1] float32
    returns:     [B, NUM_CLASSES] float32  (logits / temperature)
    """
    B = x_nchw.shape[0]
    D = weight.shape[0]
    num_classes = weight.shape[1]

    compute_dtype = jnp.bfloat16 if use_bf16_inputs else jnp.float32
    itemsize = jnp.dtype(compute_dtype).itemsize

    x_flat = x_nchw.reshape(B, D)

    # Lane-dense output: keep the class dim at exactly one 128-wide slab
    # multiple (never "fill the MXU" with extra padding -- HBM is the binding
    # resource, not MXU width).
    n_pad = _round_up(max(num_classes, 128), 128)

    # M tile: prefer 128/256 (>=2 tiles for v7x megacore at large B), otherwise
    # round the batch up to the f32 sublane (8).
    if B >= 512:
        tm = 256
    elif B >= 128:
        tm = 128
    else:
        tm = _round_up(B, 8)
    assert tm % 8 == 0, f"tm={tm} must be a multiple of 8"

    # Batch is rounded only to the sublane; any tm remainder is a partial last
    # grid tile (no big padded copy of x).
    b_pad = _round_up(B, 8)
    m_tiles = pl.cdiv(b_pad, tm)

    vmem_budget = _vmem_budget_bytes()

    # ---- resident-weight feasibility (conservative: count double buffers) ----
    d_pad_min = _round_up(D, 128)
    resident_need = (
        2 * d_pad_min * n_pad * itemsize      # weight slab (double-buffered worst case)
        + 2 * tm * d_pad_min * itemsize       # x tile double buffer
        + 2 * tm * n_pad * 4                  # f32 output tile double buffer
        + n_pad * 4                           # bias
    )
    use_resident = resident_need <= vmem_budget

    if use_resident:
        d_pad = d_pad_min
        tk_eff = d_pad
    else:
        tk_eff = min(_round_up(tk, 128), d_pad_min)
        d_pad = _round_up(D, tk_eff)
    assert tk_eff % 128 == 0, f"tk={tk_eff} must be a multiple of 128"

    # ---- glue: pad/cast only where required (zero padding is exact) ----------
    if (b_pad, d_pad) == (B, D) and x_flat.dtype == compute_dtype:
        x_p = x_flat
    else:
        x_p = jnp.pad(x_flat, ((0, b_pad - B), (0, d_pad - D))).astype(compute_dtype)
    w_p = jnp.pad(
        weight, ((0, d_pad - D), (0, n_pad - num_classes))
    ).astype(compute_dtype)
    b_p = jnp.pad(
        bias.astype(jnp.float32), (0, n_pad - num_classes)
    ).reshape(1, n_pad)
    temp = temperature.reshape(1).astype(jnp.float32)

    if use_resident:
        # Single grid axis over batch tiles; weight slab DMA'd once, resident.
        out = pl.pallas_call(
            _resident_head_kernel,
            out_shape=jax.ShapeDtypeStruct((b_pad, n_pad), jnp.float32),
            grid_spec=pltpu.PrefetchScalarGridSpec(
                num_scalar_prefetch=0,
                grid=(m_tiles,),
                in_specs=[
                    # temperature scalar resident in SMEM.
                    pl.BlockSpec(memory_space=pltpu.SMEM),
                    # x: one (tm, D) tile per batch-tile step.
                    pl.BlockSpec((tm, d_pad), lambda i: (i, 0)),
                    # weight: constant index_map -> fetched once, stays in VMEM.
                    pl.BlockSpec((d_pad, n_pad), lambda i: (0, 0)),
                    # bias: single resident tile.
                    pl.BlockSpec((1, n_pad), lambda i: (0, 0)),
                ],
                out_specs=pl.BlockSpec((tm, n_pad), lambda i: (i, 0)),
            ),
            compiler_params=pltpu.CompilerParams(
                dimension_semantics=("parallel",),
                vmem_limit_bytes=vmem_budget,
            ),
            cost_estimate=pl.CostEstimate(
                flops=2 * b_pad * d_pad * n_pad,
                transcendentals=0,
                bytes_accessed=itemsize * (b_pad * d_pad + d_pad * n_pad)
                + 4 * (b_pad * n_pad + n_pad),
            ),
        )(temp, x_p, w_p, b_p)
    else:
        # K-tiled fallback for very large D: reduction axis last, f32 VMEM
        # accumulator, bias+scale only on the final K step.
        k_tiles = d_pad // tk_eff
        out = pl.pallas_call(
            _ktiled_head_kernel,
            out_shape=jax.ShapeDtypeStruct((b_pad, n_pad), jnp.float32),
            grid_spec=pltpu.PrefetchScalarGridSpec(
                num_scalar_prefetch=0,
                grid=(m_tiles, k_tiles),
                in_specs=[
                    pl.BlockSpec(memory_space=pltpu.SMEM),
                    pl.BlockSpec((tm, tk_eff), lambda i, k: (i, k)),
                    pl.BlockSpec((tk_eff, n_pad), lambda i, k: (k, 0)),
                    pl.BlockSpec((1, n_pad), lambda i, k: (0, 0)),
                ],
                out_specs=pl.BlockSpec((tm, n_pad), lambda i, k: (i, 0)),
                scratch_shapes=[pltpu.VMEM((tm, n_pad), jnp.float32)],
            ),
            compiler_params=pltpu.CompilerParams(
                dimension_semantics=("parallel", "arbitrary"),
                vmem_limit_bytes=vmem_budget,
            ),
            cost_estimate=pl.CostEstimate(
                flops=2 * b_pad * d_pad * n_pad,
                transcendentals=0,
                # weight is re-streamed once per batch tile on this path.
                bytes_accessed=itemsize * (b_pad * d_pad + m_tiles * d_pad * n_pad)
                + 4 * (b_pad * n_pad + n_pad),
            ),
        )(temp, x_p, w_p, b_p)

    # Slice padding back off.
    return out[:B, :num_classes]


if __name__ == "__main__":
    # Small, deterministic example consistent with a classification forward.
    B, C, H, W = 2, 4, 16, 16
    NUM_CLASSES = 8
    D = C * H * W

    key = jax.random.PRNGKey(0)
    k_x, k_w, k_b = jax.random.split(key, 3)

    x = jax.random.normal(k_x, (B, C, H, W), dtype=jnp.float32)
    weight = jax.random.normal(k_w, (D, NUM_CLASSES), dtype=jnp.float32) * 0.02
    bias = jax.random.normal(k_b, (NUM_CLASSES,), dtype=jnp.float32) * 0.01
    temperature = jnp.ones((1,), dtype=jnp.float32) * 1.5  # nn.Parameter(ones(1)*1.5)

    # Plain-JAX reference of the same forward (f32 end-to-end).
    ref = (x.reshape(B, D) @ weight + bias) / temperature[0]

    # Default bf16-streaming path (f32 accumulation / epilogue).
    out_bf16 = model_with_temperature_forward(x, weight, bias, temperature)
    out_bf16 = jax.block_until_ready(out_bf16)
    assert out_bf16.shape == (B, NUM_CLASSES)
    assert jnp.allclose(out_bf16, ref, atol=5e-2, rtol=5e-2)

    # f32 streaming path (bit-accurate against the reference up to fp rounding).
    out_f32 = model_with_temperature_forward(
        x, weight, bias, temperature, use_bf16_inputs=False
    )
    out_f32 = jax.block_until_ready(out_f32)
    assert jnp.allclose(out_f32, ref, atol=1e-4, rtol=1e-4)

    print("KERNEL_OK")
</pallas_src>

<mosaic_0001>
module attributes {stable_mosaic.version = 11 : i64} {
  func.func @_resident_head_kernel(%arg0: i32, %arg1: memref<1xf32, #tpu.memory_space<smem>>, %arg2: memref<8x1024xbf16, #tpu.memory_space<vmem>>, %arg3: memref<1024x128xbf16, #tpu.memory_space<vmem>>, %arg4: memref<1x128xf32, #tpu.memory_space<vmem>>, %arg5: memref<8x128xf32, #tpu.memory_space<vmem>>) attributes {dimension_semantics = [#tpu.dimension_semantics<parallel>], iteration_bounds = array<i64: 1>, scalar_prefetch = 0 : i64, scratch_operands = 0 : i64, tpu.core_type = #tpu.core_type<tc>, window_params = [{transform_indices = @transform_0, window_bounds = array<i64: 1>}, {transform_indices = @transform_1, window_bounds = array<i64: 8, 1024>}, {pipeline_mode = #tpu.pipeline_mode<synchronous>, transform_indices = @transform_2, window_bounds = array<i64: 1024, 128>}, {pipeline_mode = #tpu.pipeline_mode<synchronous>, transform_indices = @transform_3, window_bounds = array<i64: 1, 128>}, {transform_indices = @transform_4, window_bounds = array<i64: 8, 128>}]} {
    %c0 = arith.constant 0 : index
    %0 = memref.load %arg1[%c0] : memref<1xf32, #tpu.memory_space<smem>>
    %cst = arith.constant 1.000000e+00 : f32
    %1 = arith.divf %cst, %0 : f32
    %c0_0 = arith.constant 0 : index
    %c0_1 = arith.constant 0 : index
    %2 = vector.load %arg2[%c0_0, %c0_1] : memref<8x1024xbf16, #tpu.memory_space<vmem>>, vector<8x1024xbf16>
    %c0_2 = arith.constant 0 : index
    %c0_3 = arith.constant 0 : index
    %3 = vector.load %arg3[%c0_2, %c0_3] : memref<1024x128xbf16, #tpu.memory_space<vmem>>, vector<1024x128xbf16>
    %cst_4 = arith.constant dense<0.000000e+00> : vector<8x128xf32>
    %4 = tpu.matmul %2, %3, %cst_4 {dimension_numbers = #tpu.dot_dimension_numbers<[1], [0], [0], [1], [0, 0, 1, 1], [], []>} : vector<8x1024xbf16>, vector<1024x128xbf16>, vector<8x128xf32> -> vector<8x128xf32>
    %c0_5 = arith.constant 0 : index
    %c0_6 = arith.constant 0 : index
    %5 = vector.load %arg4[%c0_5, %c0_6] : memref<1x128xf32, #tpu.memory_space<vmem>>, vector<1x128xf32>
    %6 = vector.broadcast %5 : vector<1x128xf32> to vector<8x128xf32>
    %7 = arith.addf %4, %6 : vector<8x128xf32>
    %8 = vector.broadcast %1 : f32 to vector<8x128xf32>
    %9 = arith.mulf %7, %8 : vector<8x128xf32>
    %c0_7 = arith.constant 0 : index
    %c0_8 = arith.constant 0 : index
    %10 = vector.load %arg5[%c0_7, %c0_8] : memref<8x128xf32, #tpu.memory_space<vmem>>, vector<8x128xf32>
    tpu.vector_store %arg5[%c0_7, %c0_8], %9 {strides = array<i32>} : memref<8x128xf32, #tpu.memory_space<vmem>>, vector<8x128xf32>,
    return
  }
  func.func @transform_0(%arg0: i32) -> i32 {
    %c0_i32 = arith.constant 0 : i32
    %c0_i32_0 = arith.constant 0 : i32
    return %c0_i32 : i32
  }
  func.func @transform_1(%arg0: i32) -> (i32, i32) {
    %c0_i32 = arith.constant 0 : i32
    %c0_i32_0 = arith.constant 0 : i32
    return %arg0, %c0_i32 : i32, i32
  }
  func.func @transform_2(%arg0: i32) -> (i32, i32) {
    %c0_i32 = arith.constant 0 : i32
    %c0_i32_0 = arith.constant 0 : i32
    %c0_i32_1 = arith.constant 0 : i32
    return %c0_i32, %c0_i32_0 : i32, i32
  }
  func.func @transform_3(%arg0: i32) -> (i32, i32) {
    %c0_i32 = arith.constant 0 : i32
    %c0_i32_0 = arith.constant 0 : i32
    %c0_i32_1 = arith.constant 0 : i32
    return %c0_i32, %c0_i32_0 : i32, i32
  }
  func.func @transform_4(%arg0: i32) -> (i32, i32) {
    %c0_i32 = arith.constant 0 : i32
    %c0_i32_0 = arith.constant 0 : i32
    return %arg0, %c0_i32 : i32, i32
  }
}

</mosaic_0001>

<bundles_post_ra>
// kernel: model_with_temperature_forward.1
= control target key start
LH: loop header
LB: loop body
LE: loop exit
PB: predicated region body
PF: predicated region fallthrough
CT: control target
= control target key end

     0   :  { %s1257_s2 = inlined_call_operand.vmem [shape: bf16[1024,128], index: 2, kind: input, shape index: {}]   ;;  %s1258_s3 = inlined_call_operand.vmem [shape: f32[1,128], index: 3, kind: input, shape index: {}]   ;;  %s1259_s1 = inlined_call_operand.vmem [shape: bf16[8,1024], index: 1, kind: input, shape index: {}]   ;;  %s1260_s0 = inlined_call_operand.<no memory space> [shape: f32[1], index: 0, kind: input, shape index: {}]   ;;  %s1261_s4 = inlined_call_operand.vmem [shape: f32[8,128], index: 4, kind: output, shape index: {}]  }
   0x1   :  { %v957_v0 = vld [vmem:[%s1257_s2 + $0x38] sm:$0xff]  ;;  %v956_v4 = vld [vmem:[%s1257_s2 + $0x30] sm:$0xff]  ;;  %v955_v8 = vld [vmem:[%s1257_s2 + $0x28] sm:$0xff]  ;;  %v19_v48 = vstv %s1260_s0 }
   0x2   :  { %v965_v1 = vld [vmem:[%s1257_s2 + $0x78] sm:$0xff]  ;;  %583 = vmatpush.bf16.msra.mxu0 %v957_v0  ;;  %v964_v5 = vld [vmem:[%s1257_s2 + $0x70] sm:$0xff]  ;;  %v963_v9 = vld [vmem:[%s1257_s2 + $0x68] sm:$0xff]  ;;  %1017 = vrcp.f32 %v19_v48  ;;  %v31_v61 = vand.u32 2147483648, %v19_v48  ;;  %vm25_vm0 = vweird.f32 %v19_v48  ;;  %v29_v63 = vand.u32 2147483647, %v19_v48 }
   0x3   :  { %v973_v2 = vld [vmem:[%s1257_s2 + $0xb8] sm:$0xff]  ;;  %596 = vmatpush.bf16.msra.mxu1 %v965_v1  ;;  %v972_v6 = vld [vmem:[%s1257_s2 + $0xb0] sm:$0xff]  ;;  %v971_v10 = vld [vmem:[%s1257_s2 + $0xa8] sm:$0xff] }
   0x4   :  { %v981_v3 = vld [vmem:[%s1257_s2 + $0xf8] sm:$0xff]  ;;  %609 = vmatpush.bf16.msra.mxu2 %v973_v2  ;;  %v980_v7 = vld [vmem:[%s1257_s2 + $0xf0] sm:$0xff]  ;;  %v979_v11 = vld [vmem:[%s1257_s2 + $0xe8] sm:$0xff]  ;;  %vm30_vm3 = vcmp.eq.f32.partialorder %v29_v63, 8.507059e+37 }
   0x5   :  { %622 = vmatpush.bf16.msra.mxu3 %v981_v3  ;;  %v954_v12 = vld [vmem:[%s1257_s2 + $0x20] sm:$0xff]  ;;  %v953_v16 = vld [vmem:[%s1257_s2 + $0x18] sm:$0xff]  ;;  %v952_v20 = vld [vmem:[%s1257_s2 + $0x10] sm:$0xff] }
   0x6   :  { %584 = vmatpush.bf16.msra.mxu0 %v956_v4  ;;  %v962_v13 = vld [vmem:[%s1257_s2 + $0x60] sm:$0xff]  ;;  %v961_v17 = vld [vmem:[%s1257_s2 + $0x58] sm:$0xff]  ;;  %v960_v21 = vld [vmem:[%s1257_s2 + $0x50] sm:$0xff] }
   0x7   :  { %597 = vmatpush.bf16.msra.mxu1 %v964_v5  ;;  %v970_v14 = vld [vmem:[%s1257_s2 + $0xa0] sm:$0xff]  ;;  %v969_v18 = vld [vmem:[%s1257_s2 + $0x98] sm:$0xff]  ;;  %v968_v22 = vld [vmem:[%s1257_s2 + $0x90] sm:$0xff]  ;;  %v32_v5 = vor.u32 1.1754944e-38, %v31_v61 }
   0x8   :  { %610 = vmatpush.bf16.msra.mxu2 %v972_v6  ;;  %v978_v15 = vld [vmem:[%s1257_s2 + $0xe0] sm:$0xff]  ;;  %v977_v19 = vld [vmem:[%s1257_s2 + $0xd8] sm:$0xff]  ;;  %v976_v23 = vld [vmem:[%s1257_s2 + $0xd0] sm:$0xff]  ;;  %v1018_v55 = vpop.eup %1017 }
   0x9   :  { %623 = vmatpush.bf16.msra.mxu3 %v980_v7  ;;  %v951_v24 = vld [vmem:[%s1257_s2 + $0x8] sm:$0xff]  ;;  %v35_v29 = vld [vmem:[%s1259_s1] sm:$0xff]  ;;  %v989_v38 = vld [vmem:[%s1257_s2 + $0x138] sm:$0xff]  ;;  %v21_v58 = vmul.f32 %v1018_v55, %v19_v48  ;;  %vm26_vm1 = vweird.f32 %v1018_v55 }
   0xa   :  { %585 = vmatpush.bf16.msra.mxu0 %v955_v8  ;;  %v959_v25 = vld [vmem:[%s1257_s2 + $0x48] sm:$0xff]  ;;  %v950_v30 = vld [vmem:[%s1257_s2] sm:$0xff]  ;;  %v175_v36 = vunpack.c.l.b16 %v35_v29  ;;  %v176_v37 = vunpack.c.h.b16 %v35_v29  ;;  %v997_v39 = vld [vmem:[%s1257_s2 + $0x178] sm:$0xff] }
   0xb   :  { %598 = vmatpush.bf16.msra.mxu1 %v963_v9  ;;  %v967_v26 = vld [vmem:[%s1257_s2 + $0x88] sm:$0xff]  ;;  %v958_v31 = vld [vmem:[%s1257_s2 + $0x40] sm:$0xff]  ;;  %v1005_v40 = vld [vmem:[%s1257_s2 + $0x1b8] sm:$0xff]  ;;  %v22_v62 = vsub.f32 1.0, %v21_v58 }
   0xc   :  { %611 = vmatpush.bf16.msra.mxu2 %v971_v10  ;;  %v975_v27 = vld [vmem:[%s1257_s2 + $0xc8] sm:$0xff]  ;;  %v966_v34 = vld [vmem:[%s1257_s2 + $0x80] sm:$0xff]  ;;  %v1013_v41 = vld [vmem:[%s1257_s2 + $0x1f8] sm:$0xff]  ;;  %v183_v44 = vpack.c.b16 %v175_v36, %v175_v36  ;;  %v184_v45 = vpack.c.b16 %v176_v37, %v176_v37 }
   0xd   :  { %624 = vmatpush.bf16.msra.mxu3 %v979_v11  ;;  %v36_v28 = vld [vmem:[%s1259_s1 + $0x8] sm:$0xff]  ;;  %v974_v35 = vld [vmem:[%s1257_s2 + $0xc0] sm:$0xff]  ;;  %v988_v46 = vld [vmem:[%s1257_s2 + $0x130] sm:$0xff]  ;;  %v23_v2 = vmul.f32 %v1018_v55, %v22_v62 }
   0xe   :  { %586 = vmatpush.bf16.msra.mxu0 %v954_v12  ;;  %v177_v32 = vunpack.c.l.b16 %v36_v28  ;;  %v178_v33 = vunpack.c.h.b16 %v36_v28  ;;  %v996_v47 = vld [vmem:[%s1257_s2 + $0x170] sm:$0xff]  ;;  %v987_v51 = vld [vmem:[%s1257_s2 + $0x128] sm:$0xff]  ;;  %v986_v56 = vld [vmem:[%s1257_s2 + $0x120] sm:$0xff] }
   0xf   :  { %599 = vmatpush.bf16.msra.mxu1 %v962_v13  ;;  %v1004_v49 = vld [vmem:[%s1257_s2 + $0x1b0] sm:$0xff]  ;;  %v995_v52 = vld [vmem:[%s1257_s2 + $0x168] sm:$0xff]  ;;  %v994_v57 = vld [vmem:[%s1257_s2 + $0x160] sm:$0xff]  ;;  %v24_v6 = vadd.f32 %v1018_v55, %v23_v2 }
  0x10   :  { %612 = vmatpush.bf16.msra.mxu2 %v970_v14  ;;  %v185_v42 = vpack.c.b16 %v177_v32, %v177_v32  ;;  %v186_v43 = vpack.c.b16 %v178_v33, %v178_v33  ;;  %v1012_v50 = vld [vmem:[%s1257_s2 + $0x1f0] sm:$0xff]  ;;  %v1003_v53 = vld [vmem:[%s1257_s2 + $0x1a8] sm:$0xff]  ;;  %v1002_v59 = vld [vmem:[%s1257_s2 + $0x1a0] sm:$0xff] }
  0x11   :  { %625 = vmatpush.bf16.msra.mxu3 %v978_v15  ;;  %v1011_v54 = vld [vmem:[%s1257_s2 + $0x1e8] sm:$0xff]  ;;  %v1010_v60 = vld [vmem:[%s1257_s2 + $0x1e0] sm:$0xff]  ;;  %v985_v0 = vld [vmem:[%s1257_s2 + $0x118] sm:$0xff] }
  0x12   :  { %587 = vmatpush.bf16.msra.mxu0 %v953_v16  ;;  %v993_v1 = vld [vmem:[%s1257_s2 + $0x158] sm:$0xff]  ;;  %vm27_vm2 = vmor %vm25_vm0, %vm26_vm1  ;;  %v984_v7 = vld [vmem:[%s1257_s2 + $0x110] sm:$0xff] }
  0x13   :  { %600 = vmatpush.bf16.msra.mxu1 %v961_v17  ;;  %v1001_v3 = vld [vmem:[%s1257_s2 + $0x198] sm:$0xff]  ;;  %v992_v8 = vld [vmem:[%s1257_s2 + $0x150] sm:$0xff]  ;;  %v28_v9 = vsel %vm27_vm2, %v1018_v55, %v24_v6  ;;  %v983_v13 = vld [vmem:[%s1257_s2 + $0x108] sm:$0xff] }
  0x14   :  { %613 = vmatpush.bf16.msra.mxu2 %v969_v18  ;;  %v1009_v4 = vld [vmem:[%s1257_s2 + $0x1d8] sm:$0xff]  ;;  %v1000_v10 = vld [vmem:[%s1257_s2 + $0x190] sm:$0xff]  ;;  %v33_v12 = vsel %vm30_vm3, %v32_v5, %v28_v9  ;;  %v991_v14 = vld [vmem:[%s1257_s2 + $0x148] sm:$0xff] }
  0x15   :  { %626 = vmatpush.bf16.msra.mxu3 %v977_v19  ;;  %v1008_v11 = vld [vmem:[%s1257_s2 + $0x1d0] sm:$0xff]  ;;  %1014 = vpush %v33_v12  ;;  %v999_v16 = vld [vmem:[%s1257_s2 + $0x188] sm:$0xff]  ;;  %v38_v18 = vld [vmem:[%s1259_s1 + $0x18] sm:$0xff] }
  0x16   :  { %588 = vmatpush.bf16.msra.mxu0 %v952_v20  ;;  %v37_v15 = vld [vmem:[%s1259_s1 + $0x10] sm:$0xff]  ;;  %v1007_v17 = vld [vmem:[%s1257_s2 + $0x1c8] sm:$0xff]  ;;  %v1016_v37 = vld [vmem:[%s1258_s3] ss:$0 sm:$0xff] }
  0x17   :  { %601 = vmatpush.bf16.msra.mxu1 %v960_v21  ;;  %v179_v19 = vunpack.c.l.b16 %v37_v15  ;;  %v180_v20 = vunpack.c.h.b16 %v37_v15  ;;  %v982_v21 = vld [vmem:[%s1257_s2 + $0x100] sm:$0xff] }
  0x18   :  { %614 = vmatpush.bf16.msra.mxu2 %v968_v22  ;;  %v990_v22 = vld [vmem:[%s1257_s2 + $0x140] sm:$0xff] }
  0x19   :  { %627 = vmatpush.bf16.msra.mxu3 %v976_v23  ;;  %v181_v23 = vunpack.c.l.b16 %v38_v18  ;;  %v188_v28 = vpack.c.b16 %v180_v20, %v180_v20 }
  0x1a   :  { %589 = vmatpush.bf16.msra.mxu0 %v951_v24  ;;  %v182_v24 = vunpack.c.h.b16 %v38_v18 }
  0x1b   :  { %602 = vmatpush.bf16.msra.mxu1 %v959_v25  ;;  %v998_v25 = vld [vmem:[%s1257_s2 + $0x180] sm:$0xff]  ;;  %v189_v29 = vpack.c.b16 %v181_v23, %v181_v23 }
  0x1c   :  { %615 = vmatpush.bf16.msra.mxu2 %v967_v26  ;;  %v1006_v26 = vld [vmem:[%s1257_s2 + $0x1c0] sm:$0xff] }
  0x1d   :  { %628 = vmatpush.bf16.msra.mxu3 %v975_v27  ;;  %v187_v27 = vpack.c.b16 %v179_v19, %v179_v19 }
  0x1e   :  { %590 = vmatpush.bf16.msra.mxu0 %v950_v30  ;;  %v190_v30 = vpack.c.b16 %v182_v24, %v182_v24 }
  0x1f   :  { %603 = vmatpush.bf16.msra.mxu1 %v958_v31 }
  0x20   :  { %616 = vmatpush.bf16.msra.mxu2 %v966_v34 }
  0x21   :  { %629 = vmatpush.bf16.msra.mxu3 %v974_v35  ;;  %591 = vmatmul.bf16.vlgmr.msra.gmra.mxu0 %v183_v44 }
  0x22   :  { %635 = vmatpush.bf16.msrb.mxu0 %v989_v38  ;;  %604 = vmatmul.bf16.vlgmr.msra.gmra.mxu1 %v184_v45 }
  0x23   :  { %648 = vmatpush.bf16.msrb.mxu1 %v997_v39  ;;  %617 = vmatmul.bf16.vlgmr.msra.gmra.mxu2 %v185_v42 }
  0x24   :  { %661 = vmatpush.bf16.msrb.mxu2 %v1005_v40  ;;  %630 = vmatmul.bf16.vlgmr.msra.gmra.mxu3 %v186_v43 }
  0x25   :  { %674 = vmatpush.bf16.msrb.mxu3 %v1013_v41 }
  0x26   :  { %636 = vmatpush.bf16.msrb.mxu0 %v988_v46 }
  0x27   :  { %649 = vmatpush.bf16.msrb.mxu1 %v996_v47 }
  0x28   :  { %662 = vmatpush.bf16.msrb.mxu2 %v1004_v49 }
  0x29   :  { %675 = vmatpush.bf16.msrb.mxu3 %v1012_v50 }
  0x2a   :  { %637 = vmatpush.bf16.msrb.mxu0 %v987_v51 }
  0x2b   :  { %650 = vmatpush.bf16.msrb.mxu1 %v995_v52 }
  0x2c   :  { %663 = vmatpush.bf16.msrb.mxu2 %v1003_v53 }
  0x2d   :  { %676 = vmatpush.bf16.msrb.mxu3 %v1011_v54 }
  0x2e   :  { %638 = vmatpush.bf16.msrb.mxu0 %v986_v56 }
  0x2f   :  { %651 = vmatpush.bf16.msrb.mxu1 %v994_v57 }
  0x30   :  { %664 = vmatpush.bf16.msrb.mxu2 %v1002_v59 }
  0x31   :  { %677 = vmatpush.bf16.msrb.mxu3 %v1010_v60 }
  0x32   :  { %639 = vmatpush.bf16.msrb.mxu0 %v985_v0 }
  0x33   :  { %652 = vmatpush.bf16.msrb.mxu1 %v993_v1 }
  0x34   :  { %665 = vmatpush.bf16.msrb.mxu2 %v1001_v3 }
  0x35   :  { %678 = vmatpush.bf16.msrb.mxu3 %v1009_v4 }
  0x36   :  { %640 = vmatpush.bf16.msrb.mxu0 %v984_v7 }
  0x37   :  { %653 = vmatpush.bf16.msrb.mxu1 %v992_v8 }
  0x38   :  { %666 = vmatpush.bf16.msrb.mxu2 %v1000_v10 }
  0x39   :  { %679 = vmatpush.bf16.msrb.mxu3 %v1008_v11 }
  0x3a   :  { %641 = vmatpush.bf16.msrb.mxu0 %v983_v13 }
  0x3b   :  { %654 = vmatpush.bf16.msrb.mxu1 %v991_v14 }
  0x3c   :  { %667 = vmatpush.bf16.msrb.mxu2 %v999_v16 }
  0x3d   :  { %680 = vmatpush.bf16.msrb.mxu3 %v1007_v17 }
  0x3e   :  { %642 = vmatpush.bf16.msrb.mxu0 %v982_v21 }
  0x3f   :  { %655 = vmatpush.bf16.msrb.mxu1 %v990_v22 }
  0x40   :  { %668 = vmatpush.bf16.msrb.mxu2 %v998_v25 }
  0x41   :  { %681 = vmatpush.bf16.msrb.mxu3 %v1006_v26  ;;  %643 = vmatmul.bf16.vlgmr.msrb.gmra.mxu0 %v187_v27 }
  0x42   :  { %656 = vmatmul.bf16.vlgmr.msrb.gmra.mxu1 %v188_v28 }
  0x43   :  { %669 = vmatmul.bf16.vlgmr.msrb.gmra.mxu2 %v189_v29 }
  0x44   :  { %682 = vmatmul.bf16.vlgmr.msrb.gmra.mxu3 %v190_v30 }
  0x46   :  { %s1015_s21 = spop %1014 }
  0x47   :  { %v687_v53 = vstv %s1015_s21 }
  0x9e   :  { %v592_v31 = vpop.f32.mrf.mxu0 }
  0x9f   :  { %v605_v32 = vpop.f32.mrf.mxu1  ;;  %v593_v40 = vadd.f32 %v1016_v37, %v592_v31 }
  0xa1   :  { %v606_v41 = vadd.f32 %v605_v32, %v593_v40 }
  0xa6   :  { %v618_v33 = vpop.f32.mrf.mxu2  ;;  %v594_v35 = vpop.f32.mrf.mxu0 }
  0xa7   :  { %v631_v34 = vpop.f32.mrf.mxu3  ;;  %v607_v36 = vpop.f32.mrf.mxu1  ;;  %v619_v42 = vadd.f32 %v618_v33, %v606_v41 }
  0xa9   :  { %v632_v43 = vadd.f32 %v631_v34, %v619_v42 }
  0xae   :  { %v620_v38 = vpop.f32.mrf.mxu2 }
  0xaf   :  { %v633_v39 = vpop.f32.mrf.mxu3 }
  0xbe   :  { %v644_v44 = vpop.f32.mrf.mxu0 }
  0xbf   :  { %v657_v45 = vpop.f32.mrf.mxu1  ;;  %v645_v46 = vadd.f32 %v644_v44, %v632_v43 }
  0xc1   :  { %v658_v47 = vadd.f32 %v657_v45, %v645_v46 }
  0xc6   :  { %v670_v48 = vpop.f32.mrf.mxu2  ;;  %v646_v51 = vpop.f32.mrf.mxu0 }
  0xc7   :  { %v683_v49 = vpop.f32.mrf.mxu3  ;;  %v671_v50 = vadd.f32 %v670_v48, %v658_v47  ;;  %v659_v52 = vpop.f32.mrf.mxu1 }
  0xc9   :  { %v684_v54 = vadd.f32 %v683_v49, %v671_v50 }
  0xcb   :  { %v688_v55 = vmul.f32 %v687_v53, %v684_v54 }
  0xcd   :  { %689 = vst [vmem:[%s1261_s4] sm:$0xff] %v688_v55 }
  0xce   :  { %v672_v56 = vpop.f32.mrf.mxu2 }
  0xcf   :  { %v685_v57 = vpop.f32.mrf.mxu3 }

</bundles_post_ra>
